<compile_context>
chip_gen: v7x
topology: tpu7x:2x2x1
jax: 0.10.0
libtpu: 0.0.40
codegen_flags: <defaults>
</compile_context>

<pallas_src>
import functools
import math

import jax
import jax.numpy as jnp
from jax.experimental import pallas as pl
from jax.experimental.pallas import tpu as pltpu

EPS = 1e-5
_MAX_SINGLE_K = 4608            # largest reduction dim in resnet101 (layer4 3x3)
_FUSED_MAX_ROWS = 4096          # cap on N*H*W rows handled by the fused 3x3 kernel
_FUSED_MAX_BYTES = 6 * 1024 * 1024


def _round_up(x, m):
    return ((x + m - 1) // m) * m


def _pick_tn(n_out):
    """Lane-dim tile: keep >=2 blocks on the parallel axis when Cout >= 256."""
    if n_out <= 128:
        return n_out
    if n_out % 256 == 0 and n_out > 256:
        return 256
    if n_out % 128 == 0:
        return 128
    return n_out


# ----------------------------------------------------------------------------
# GEMM (+bias, +residual, +ReLU) Pallas kernels
# ----------------------------------------------------------------------------

def _mm_epilogue(acc, c_ref, r_ref, relu):
    out = acc + c_ref[...]
    if r_ref is not None:
        out = out + r_ref[...].astype(jnp.float32)
    if relu:
        out = jnp.maximum(out, 0.0)
    return out


def _mm_single_kernel(*refs, relu, has_residual):
    """Whole K in one step: no scratch accumulator, write the tile directly."""
    if has_residual:
        a_ref, b_ref, c_ref, r_ref, o_ref = refs
    else:
        a_ref, b_ref, c_ref, o_ref = refs
        r_ref = None
    acc = jnp.dot(a_ref[...], b_ref[...], preferred_element_type=jnp.float32)
    o_ref[...] = _mm_epilogue(acc, c_ref, r_ref, relu).astype(o_ref.dtype)


def _mm_multi_kernel(*refs, relu, has_residual):
    """K split over grid axis 2: f32 VMEM accumulator + init/finalize phases."""
    if has_residual:
        a_ref, b_ref, c_ref, r_ref, o_ref, acc_ref = refs
    else:
        a_ref, b_ref, c_ref, o_ref, acc_ref = refs
        r_ref = None

    @pl.when(pl.program_id(2) == 0)
    def _init():
        acc_ref[...] = jnp.zeros_like(acc_ref)

    acc_ref[...] += jnp.dot(a_ref[...], b_ref[...],
                            preferred_element_type=jnp.float32)

    @pl.when(pl.program_id(2) == pl.num_programs(2) - 1)
    def _finalize():
        o_ref[...] = _mm_epilogue(acc_ref[...], c_ref, r_ref,
                                  relu).astype(o_ref.dtype)


def _matmul_bias_act(A, B, bias, *, relu, residual=None):
    """O = act((A @ B) + bias [+ residual]).  bf16 MXU inputs, f32 accumulate.

    B and bias come pre-folded (BN scale already in B's columns) and pre-padded
    along K from param-prep; A is only padded for the ragged stem (K=147->152).
    Traceable (no jit here) -- callers are cached, jitted conv wrappers.
    """
    m, k = A.shape
    kp, n = B.shape
    if kp <= _MAX_SINGLE_K or kp % 512 != 0:
        tk = kp                       # single reduction step for every conv here
    else:
        tk = 512
    nk = kp // tk
    tm = min(_round_up(m, 8), 256)
    mp = _round_up(m, tm)
    tn = _pick_tn(n)

    A = A.astype(jnp.bfloat16)
    if (mp, kp) != (m, k):
        A = jnp.pad(A, ((0, mp - m), (0, kp - k)))

    has_res = residual is not None
    args = [A, B, bias]
    in_specs = [
        pl.BlockSpec((tm, tk), lambda i, j, s: (i, s)),
        pl.BlockSpec((tk, tn), lambda i, j, s: (s, j)),
        pl.BlockSpec((1, tn), lambda i, j, s: (0, j)),
    ]
    if has_res:
        R = residual.astype(jnp.bfloat16)
        if mp != m:
            R = jnp.pad(R, ((0, mp - m), (0, 0)))
        args.append(R)
        in_specs.append(pl.BlockSpec((tm, tn), lambda i, j, s: (i, j)))

    if nk == 1:
        kernel = functools.partial(_mm_single_kernel, relu=relu,
                                   has_residual=has_res)
        scratch = []
    else:
        kernel = functools.partial(_mm_multi_kernel, relu=relu,
                                   has_residual=has_res)
        scratch = [pltpu.VMEM((tm, tn), jnp.float32)]

    out = pl.pallas_call(
        kernel,
        out_shape=jax.ShapeDtypeStruct((mp, n), jnp.bfloat16),
        grid_spec=pltpu.PrefetchScalarGridSpec(
            num_scalar_prefetch=0,
            grid=(mp // tm, n // tn, nk),
            in_specs=in_specs,
            out_specs=pl.BlockSpec((tm, tn), lambda i, j, s: (i, j)),
            scratch_shapes=scratch,
        ),
        compiler_params=pltpu.CompilerParams(
            dimension_semantics=("parallel", "parallel", "arbitrary")),
    )(*args)
    if mp != m:
        out = out[:m]
    return out


# ----------------------------------------------------------------------------
# Fused direct 3x3 / stride-1 conv kernel (no im2col in HBM)
# ----------------------------------------------------------------------------

def _conv3x3_fused_kernel(x0_ref, x1_ref, x2_ref, w_ref, b_ref, o_ref,
                          *, n, ho, wo):
    """Accumulate the 9 shifted taps in-kernel.

    x{0,1,2}_ref are the column-shifted (dx = 0/1/2) views of the zero-padded
    NHWC activation, each fully resident in VMEM (constant block index), so the
    in-kernel slices are leading-dim only and the (n,h,w)->rows collapse is
    layout-friendly (w % 8 == 0).
    """
    cin = x0_ref.shape[-1]
    tn = o_ref.shape[-1]
    xs = (x0_ref, x1_ref, x2_ref)
    acc = jnp.zeros((n * ho * wo, tn), jnp.float32)
    for dy in range(3):
        for dx in range(3):
            a = xs[dx][:, dy:dy + ho, :, :].reshape(n * ho * wo, cin)
            acc = acc + jnp.dot(a, w_ref[3 * dy + dx],
                                preferred_element_type=jnp.float32)
    out = jnp.maximum(acc + b_ref[...], 0.0)
    o_ref[...] = out.reshape(n, ho, wo, tn).astype(o_ref.dtype)


# ----------------------------------------------------------------------------
# MaxPool 3x3 / stride 2 / pad 1 kernel (gridded over output rows)
# ----------------------------------------------------------------------------

def _maxpool_kernel(xe2_ref, xe1_ref, xo2_ref, xo1_ref, o_ref):
    wo = o_ref.shape[2]
    rowe = jnp.maximum(jnp.maximum(xe2_ref[:, 0], xe2_ref[:, 1]), xe1_ref[:, 0])
    rowo = jnp.maximum(jnp.maximum(xo2_ref[:, 0], xo2_ref[:, 1]), xo1_ref[:, 0])
    m = jnp.maximum(jnp.maximum(rowe[:, :wo, :], rowe[:, 1:wo + 1, :]),
                    rowo[:, :wo, :])
    o_ref[...] = m[:, None, :, :]


# ----------------------------------------------------------------------------
# Cached, jitted per-signature builders (one Mosaic compile per unique shape)
# ----------------------------------------------------------------------------

def _im2col(x, kh, kw, stride, pad):
    n, h, w, c = x.shape
    ho = (h + 2 * pad - kh) // stride + 1
    wo = (w + 2 * pad - kw) // stride + 1
    xp = jnp.pad(x, ((0, 0), (pad, pad), (pad, pad), (0, 0)))
    cols = [xp[:, dy:dy + stride * ho:stride, dx:dx + stride * wo:stride, :]
            for dy in range(kh) for dx in range(kw)]
    patches = jnp.concatenate(cols, axis=-1)          # [N, Ho, Wo, kh*kw*C]
    return patches.reshape(n * ho * wo, kh * kw * c), (n, ho, wo)


@functools.lru_cache(maxsize=None)
def _build_conv1x1(n, h, w, cin, cout, stride, relu, has_res):
    def fn(x, B, bias, *res):
        xs = x[:, ::stride, ::stride, :] if stride > 1 else x
        hh, ww = xs.shape[1], xs.shape[2]
        A = xs.reshape(n * hh * ww, cin)
        r = res[0].reshape(n * hh * ww, cout) if has_res else None
        out = _matmul_bias_act(A, B, bias, relu=relu, residual=r)
        return out.reshape(n, hh, ww, cout)
    return jax.jit(fn)


@functools.lru_cache(maxsize=None)
def _build_conv3x3(n, h, w, cin, cout, stride):
    use_fused = (stride == 1 and w % 8 == 0
                 and n * h * w <= _FUSED_MAX_ROWS
                 and 3 * n * (h + 2) * w * cin * 2 <= _FUSED_MAX_BYTES)
    if use_fused:
        tn = cout if cout <= 128 else 128
        if cout % tn:
            tn = cout
        kernel = functools.partial(_conv3x3_fused_kernel, n=n, ho=h, wo=w)
        x_spec = pl.BlockSpec((n, h + 2, w, cin), lambda j: (0, 0, 0, 0))
        call = pl.pallas_call(
            kernel,
            out_shape=jax.ShapeDtypeStruct((n, h, w, cout), jnp.bfloat16),
            grid_spec=pltpu.PrefetchScalarGridSpec(
                num_scalar_prefetch=0,
                grid=(cout // tn,),
                in_specs=[x_spec, x_spec, x_spec,
                          pl.BlockSpec((9, cin, tn), lambda j: (0, 0, j)),
                          pl.BlockSpec((1, tn), lambda j: (0, j))],
                out_specs=pl.BlockSpec((n, h, w, tn), lambda j: (0, 0, 0, j)),
            ),
            compiler_params=pltpu.CompilerParams(
                dimension_semantics=("parallel",)),
        )

        def fn(x, w9, bias):
            xp = jnp.pad(x.astype(jnp.bfloat16),
                         ((0, 0), (1, 1), (1, 1), (0, 0)))
            return call(xp[:, :, 0:w, :], xp[:, :, 1:w + 1, :],
                        xp[:, :, 2:w + 2, :], w9, bias)
    else:
        # TODO(synk): tile the H axis (dynamic-start window loads) so stride-2 /
        # narrow-width 3x3 convs also avoid the im2col materialization below.
        def fn(x, w9, bias):
            A, (n2, ho, wo) = _im2col(x.astype(jnp.bfloat16), 3, 3, stride, 1)
            B = w9.reshape(9 * cin, cout)              # contiguous -> free view
            out = _matmul_bias_act(A, B, bias, relu=True)
            return out.reshape(n2, ho, wo, cout)
    return jax.jit(fn)


@functools.lru_cache(maxsize=None)
def _build_stem(n, h, w, cin, cout):
    def fn(x, B, bias):
        A, (n2, ho, wo) = _im2col(x, 7, 7, 2, 3)
        out = _matmul_bias_act(A, B, bias, relu=True)
        return out.reshape(n2, ho, wo, cout)
    return jax.jit(fn)


@functools.lru_cache(maxsize=None)
def _build_maxpool(n, h, w, c):
    ho = (h + 2 - 3) // 2 + 1
    wo = (w + 2 - 3) // 2 + 1
    hp = (h + 2) + ((h + 2) % 2)      # padded rows, made even for row blocks of 2
    we = (w + 2 + 1) // 2             # even padded columns
    wod = (w + 2) // 2                # odd padded columns
    call = pl.pallas_call(
        _maxpool_kernel,
        out_shape=jax.ShapeDtypeStruct((n, ho, wo, c), jnp.bfloat16),
        grid_spec=pltpu.PrefetchScalarGridSpec(
            num_scalar_prefetch=0,
            grid=(ho,),
            in_specs=[
                pl.BlockSpec((n, 2, we, c), lambda y: (0, y, 0, 0)),
                pl.BlockSpec((n, 1, we, c), lambda y: (0, 2 * y + 2, 0, 0)),
                pl.BlockSpec((n, 2, wod, c), lambda y: (0, y, 0, 0)),
                pl.BlockSpec((n, 1, wod, c), lambda y: (0, 2 * y + 2, 0, 0)),
            ],
            out_specs=pl.BlockSpec((n, 1, wo, c), lambda y: (0, y, 0, 0)),
        ),
        compiler_params=pltpu.CompilerParams(
            dimension_semantics=("parallel",)),
    )
    pad_val = float(jnp.finfo(jnp.bfloat16).min)

    def fn(x):
        xp = jnp.pad(x.astype(jnp.bfloat16), ((0, 0), (1, 1), (1, 1), (0, 0)),
                     constant_values=pad_val)
        if xp.shape[1] < hp:
            xp = jnp.pad(xp, ((0, 0), (0, hp - xp.shape[1]), (0, 0), (0, 0)),
                         constant_values=pad_val)
        xe = xp[:, :, 0::2, :]
        xo = xp[:, :, 1::2, :]
        return call(xe, xe, xo, xo)

    return jax.jit(fn)


# ----------------------------------------------------------------------------
# Conv wrappers
# ----------------------------------------------------------------------------

def conv1x1_bn(x, prep, *, stride, relu, residual=None):
    n, h, w, cin = x.shape
    fn = _build_conv1x1(n, h, w, cin, prep["cout"], stride, bool(relu),
                        residual is not None)
    if residual is None:
        return fn(x, prep["B"], prep["bias"])
    return fn(x, prep["B"], prep["bias"], residual)


def conv3x3_bn_relu(x, prep, *, stride):
    n, h, w, cin = x.shape
    fn = _build_conv3x3(n, h, w, cin, prep["cout"], stride)
    return fn(x, prep["W9"], prep["bias"])


def conv_stem(x, prep):
    n, h, w, cin = x.shape
    return _build_stem(n, h, w, cin, prep["cout"])(x, prep["B"], prep["bias"])


def maxpool_3x3_s2_p1(x):
    n, h, w, c = x.shape
    return _build_maxpool(n, h, w, c)(x)


# ----------------------------------------------------------------------------
# One-time parameter preparation (BN fold + reshape + pad + bf16 cast)
# ----------------------------------------------------------------------------

def _fold_bn(bn):
    scale = bn["gamma"] / jnp.sqrt(bn["var"] + EPS)
    bias = bn["beta"] - bn["mean"] * scale
    return scale, bias


def _prep_conv_gemm(w_hwio, bn):
    kh, kw, cin, cout = w_hwio.shape
    scale, bias = _fold_bn(bn)
    B = (w_hwio.astype(jnp.float32) * scale).reshape(kh * kw * cin, cout)
    k = kh * kw * cin
    kp = _round_up(k, 8)
    if kp != k:
        B = jnp.pad(B, ((0, kp - k), (0, 0)))
    return {"B": B.astype(jnp.bfloat16),
            "bias": bias.reshape(1, cout).astype(jnp.float32),
            "cout": cout}


def _prep_conv_3x3(w_hwio, bn):
    _, _, cin, cout = w_hwio.shape
    scale, bias = _fold_bn(bn)
    w9 = (w_hwio.astype(jnp.float32) * scale).reshape(9, cin, cout)
    return {"W9": w9.astype(jnp.bfloat16),
            "bias": bias.reshape(1, cout).astype(jnp.float32),
            "cin": cin, "cout": cout}


_LAYER_CFG = (("layer1", 64, 3, 1),
              ("layer2", 128, 4, 2),
              ("layer3", 256, 23, 2),
              ("layer4", 512, 3, 2))


def prepare_encoder_params(raw):
    prep = {"stem": _prep_conv_gemm(raw["conv1_w"], raw["bn1"])}
    for name, _, _, layer_stride in _LAYER_CFG:
        blocks = []
        for bi, blk in enumerate(raw[name]):
            bp = {"stride": layer_stride if bi == 0 else 1,
                  "conv1": _prep_conv_gemm(blk["conv1_w"], blk["bn1"]),
                  "conv2": _prep_conv_3x3(blk["conv2_w"], blk["bn2"]),
                  "conv3": _prep_conv_gemm(blk["conv3_w"], blk["bn3"])}
            if "down_w" in blk:
                bp["down"] = _prep_conv_gemm(blk["down_w"], blk["down_bn"])
            blocks.append(bp)
        prep[name] = blocks
    return prep


# ----------------------------------------------------------------------------
# Bottleneck / encoder structure (torchvision semantics)
# ----------------------------------------------------------------------------

def bottleneck(x, p):
    stride = p["stride"]
    identity = x
    out = conv1x1_bn(x, p["conv1"], stride=1, relu=True)
    out = conv3x3_bn_relu(out, p["conv2"], stride=stride)
    if "down" in p:
        identity = conv1x1_bn(x, p["down"], stride=stride, relu=False)
    out = conv1x1_bn(out, p["conv3"], stride=1, relu=True, residual=identity)
    return out


def resnet101_encoder_forward(prep, x_nchw):
    """Matches ResNet101Encoder.forward: returns [relu(bn1(conv1)), layer1..layer4]."""
    x = jnp.transpose(x_nchw, (0, 2, 3, 1)).astype(jnp.bfloat16)  # NCHW -> NHWC
    enc = []
    e1 = conv_stem(x, prep["stem"])
    enc.append(e1)
    y = maxpool_3x3_s2_p1(e1)
    for name, _, _, _ in _LAYER_CFG:
        for blk in prep[name]:
            y = bottleneck(y, blk)
        enc.append(y)
    # back to NCHW / f32 to match the PyTorch module's output convention
    return [jnp.transpose(e, (0, 3, 1, 2)).astype(jnp.float32) for e in enc]


# ----------------------------------------------------------------------------
# Deterministic parameter initialization (shapes follow torchvision resnet101)
# ----------------------------------------------------------------------------

class _KeyGen:
    def __init__(self, key):
        self.key = key
        self.i = 0

    def __call__(self):
        self.i += 1
        return jax.random.fold_in(self.key, self.i)


def _init_conv(key, kh, kw, cin, cout):
    std = 1.0 / math.sqrt(kh * kw * cin)
    return std * jax.random.normal(key, (kh, kw, cin, cout), jnp.float32)


def _init_bn(key, c):
    k1, k2, k3, k4 = jax.random.split(key, 4)
    return {
        "gamma": 1.0 + 0.1 * jax.random.normal(k1, (c,), jnp.float32),
        "beta": 0.1 * jax.random.normal(k2, (c,), jnp.float32),
        "mean": 0.1 * jax.random.normal(k3, (c,), jnp.float32),
        "var": 1.0 + 0.1 * jax.random.uniform(k4, (c,), jnp.float32),
    }


def _make_bottleneck_params(kg, inplanes, planes, stride):
    width = planes  # groups=1, base_width=64
    p = {
        "conv1_w": _init_conv(kg(), 1, 1, inplanes, width),
        "bn1": _init_bn(kg(), width),
        "conv2_w": _init_conv(kg(), 3, 3, width, width),
        "bn2": _init_bn(kg(), width),
        "conv3_w": _init_conv(kg(), 1, 1, width, planes * 4),
        "bn3": _init_bn(kg(), planes * 4),
    }
    if stride != 1 or inplanes != planes * 4:
        p["down_w"] = _init_conv(kg(), 1, 1, inplanes, planes * 4)
        p["down_bn"] = _init_bn(kg(), planes * 4)
    return p


def make_resnet101_encoder_params(key):
    kg = _KeyGen(key)
    params = {"conv1_w": _init_conv(kg(), 7, 7, 3, 64), "bn1": _init_bn(kg(), 64)}
    inplanes = 64
    for name, planes, blocks, stride in _LAYER_CFG:
        layer = [_make_bottleneck_params(kg, inplanes, planes, stride)]
        inplanes = planes * 4
        for _ in range(blocks - 1):
            layer.append(_make_bottleneck_params(kg, inplanes, planes, 1))
        params[name] = layer
    return params


# ----------------------------------------------------------------------------

if __name__ == "__main__":
    key = jax.random.PRNGKey(0)
    pkey, xkey = jax.random.split(key)
    raw_params = make_resnet101_encoder_params(pkey)
    prep = prepare_encoder_params(raw_params)   # BN fold / reshape / bf16, once

    # small input consistent with the module: NCHW, 3 input channels
    x = jax.random.normal(xkey, (2, 3, 64, 64), jnp.float32)

    outs = resnet101_encoder_forward(prep, x)
    outs = [jax.block_until_ready(o) for o in outs]

    expected = [(2, 64, 32, 32), (2, 256, 16, 16), (2, 512, 8, 8),
                (2, 1024, 4, 4), (2, 2048, 2, 2)]
    assert [tuple(o.shape) for o in outs] == expected, \
        [tuple(o.shape) for o in outs]
    assert all(bool(jnp.all(jnp.isfinite(o))) for o in outs)
    print("KERNEL_OK")
</pallas_src>

<mosaic_0001>
module attributes {stable_mosaic.version = 11 : i64} {
  func.func @_mm_single_kernel(%arg0: i32, %arg1: i32, %arg2: i32, %arg3: memref<256x152xbf16, #tpu.memory_space<vmem>>, %arg4: memref<152x64xbf16, #tpu.memory_space<vmem>>, %arg5: memref<1x64xf32, #tpu.memory_space<vmem>>, %arg6: memref<256x64xbf16, #tpu.memory_space<vmem>>) attributes {dimension_semantics = [#tpu.dimension_semantics<parallel>, #tpu.dimension_semantics<parallel>, #tpu.dimension_semantics<arbitrary>], iteration_bounds = array<i64: 8, 1, 1>, scalar_prefetch = 0 : i64, scratch_operands = 0 : i64, tpu.core_type = #tpu.core_type<tc>, window_params = [{transform_indices = @transform_0, window_bounds = array<i64: 256, 152>}, {transform_indices = @transform_1, window_bounds = array<i64: 152, 64>}, {transform_indices = @transform_2, window_bounds = array<i64: 1, 64>}, {transform_indices = @transform_3, window_bounds = array<i64: 256, 64>}]} {
    %c0 = arith.constant 0 : index
    %c0_0 = arith.constant 0 : index
    %0 = vector.load %arg3[%c0, %c0_0] : memref<256x152xbf16, #tpu.memory_space<vmem>>, vector<256x152xbf16>
    %c0_1 = arith.constant 0 : index
    %c0_2 = arith.constant 0 : index
    %1 = vector.load %arg4[%c0_1, %c0_2] : memref<152x64xbf16, #tpu.memory_space<vmem>>, vector<152x64xbf16>
    %cst = arith.constant dense<0.000000e+00> : vector<256x64xf32>
    %2 = tpu.matmul %0, %1, %cst {dimension_numbers = #tpu.dot_dimension_numbers<[1], [0], [0], [1], [0, 0, 1, 1], [], []>} : vector<256x152xbf16>, vector<152x64xbf16>, vector<256x64xf32> -> vector<256x64xf32>
    %c0_3 = arith.constant 0 : index
    %c0_4 = arith.constant 0 : index
    %3 = vector.load %arg5[%c0_3, %c0_4] : memref<1x64xf32, #tpu.memory_space<vmem>>, vector<1x64xf32>
    %4 = vector.broadcast %3 : vector<1x64xf32> to vector<256x64xf32>
    %5 = arith.addf %2, %4 : vector<256x64xf32>
    %cst_5 = arith.constant 0.000000e+00 : f32
    %6 = vector.broadcast %cst_5 : f32 to vector<256x64xf32>
    %7 = arith.maximumf %5, %6 : vector<256x64xf32>
    %8 = arith.truncf %7 : vector<256x64xf32> to vector<256x64xbf16>
    %c0_6 = arith.constant 0 : index
    %c0_7 = arith.constant 0 : index
    %9 = vector.load %arg6[%c0_6, %c0_7] : memref<256x64xbf16, #tpu.memory_space<vmem>>, vector<256x64xbf16>
    tpu.vector_store %arg6[%c0_6, %c0_7], %8 {strides = array<i32>} : memref<256x64xbf16, #tpu.memory_space<vmem>>, vector<256x64xbf16>,
    return
  }
  func.func @transform_0(%arg0: i32, %arg1: i32, %arg2: i32) -> (i32, i32) {
    %c0_i32 = arith.constant 0 : i32
    return %arg0, %arg2 : i32, i32
  }
  func.func @transform_1(%arg0: i32, %arg1: i32, %arg2: i32) -> (i32, i32) {
    %c0_i32 = arith.constant 0 : i32
    return %arg2, %arg1 : i32, i32
  }
  func.func @transform_2(%arg0: i32, %arg1: i32, %arg2: i32) -> (i32, i32) {
    %c0_i32 = arith.constant 0 : i32
    %c0_i32_0 = arith.constant 0 : i32
    return %c0_i32, %arg1 : i32, i32
  }
  func.func @transform_3(%arg0: i32, %arg1: i32, %arg2: i32) -> (i32, i32) {
    %c0_i32 = arith.constant 0 : i32
    return %arg0, %arg1 : i32, i32
  }
}

</mosaic_0001>

<bundles_post_ra>
// kernel: fn.1
= control target key start
LH: loop header
LB: loop body
LE: loop exit
PB: predicated region body
PF: predicated region fallthrough
CT: control target
= control target key end

     0   :  { %8 = vsyncpa [#allocation3], 0  ;;  %s1735_s0 = inlined_call_operand.vmem [shape: bf16[2048,152], index: 0, kind: input, shape index: {}]   ;;  %s1736_s1 = inlined_call_operand.vmem [shape: bf16[152,64], index: 1, kind: input, shape index: {}]   ;;  %s1737_s2 = inlined_call_operand.vmem [shape: f32[1,64], index: 2, kind: input, shape index: {}]   ;;  %s1738_s3 = inlined_call_operand.hbm [shape: bf16[2048,64], index: 3, kind: output, shape index: {}]  }
   0x1   :  { %10 = vsyncpa [#allocation3 + $0x1], 0  ;;  %s1433_s12 = smov 0   ;;  %s1435_s13 = smov 0  }
   0x2   :  { %s1437_s14 = smov 0   ;;  %s1439_s15 = smov 0  }
   0x3   :  { %s1441_s16 = smov 0   ;;  %s1443_s17 = smov 0  }
   0x4 LB: > { %s1052_s18 = sadd.s32 4294967295, %s1407_s17   ;;  %s1053_s19 = sadd.s32 4294967294, %s1407_s17   ;;  %s1407_s17 = sphi %s1443_s17, %s16_s17   ;;  %s1403_s16 = sphi %s1441_s16, %s1745_s16   ;;  %s1399_s15 = sphi %s1439_s15, %s1744_s15   ;;  %s1395_s14 = sphi %s1437_s14, %s1743_s14   ;;  %s1391_s13 = sphi %s1435_s13, %s1742_s13   ;;  %s1387_s12 = sphi %s1433_s12, %s1741_s12  }
   0x5   : > { %s35_s20 = sadd.s32 1, %s1403_s16  ;;  %s126_s21 = sadd.s32 1, %s1395_s14 }
   0x6   : > { %p37_p0 = scmp.ge.s32.totalorder %s35_s20, 8  ;;  %p136_p1 = scmp.ne.s32.totalorder %s1395_s14, %s1391_s13 }
   0x7   : > { %p137_p2 = scmp.eq.s32.totalorder %s1052_s18, 7  ;;  %p142_p3 = scmp.ne.s32.totalorder %s1391_s13, %s1387_s12 }
   0x8   : > { %s1747_s20 = smov (%p37_p0, %s35_s20), 0  ;;  %p143_p5 = scmp.eq.s32.totalorder %s1053_s19, 7 }
   0x9   : > { %p1473_p4 = por %p137_p2, %p136_p1  ;;  %s121_s23 = ssub.s32 %s1403_s16, %s1747_s20 }
   0xa   : > { %p1058_p6 = scmp.ge.s32.totalorder %s1407_s17, 1  ;;  %p124_p7 = scmp.eq.s32.totalorder %s121_s23, 0 }
   0xb   : > { %p1480_p8 = por %p143_p5, %p142_p3  ;;  %p194_p9 = scmp.lt.s32.totalorder %s1407_s17, 9 }
   0xc   : > { %s1486_s25 = scalar_select %p124_p7, %s1395_s14, %s126_s21  }
   0xd   : > { %p195_p10 = pnand %p1058_p6, %p194_p9 }
   0xe   : > { %v1271_v0 = vld [vmem:[%s1736_s1] sm:$0xff] (!%p195_p10)   ;;  %v1409_v1 = vmov (!%p195_p10), 0   ;;  %v1272_v2 = vld [vmem:[%s1736_s1 + $0x8] sm:$0xff] (!%p195_p10)   ;;  %s1060_s30 = sshll.u32 (!%p195_p10), %s1399_s15, 5  ;;  %v1273_v3 = vld [vmem:[%s1736_s1 + $0x10] sm:$0xff] (!%p195_p10)   ;;  %vm519_vm0 = vcmask (!%p195_p10), 195584  }
   0xf   : > { %198 = sbr.rel (%p195_p10) target bundleno = 346 (0x15a), region = 32  ;;  %572 = vmatprep.subr.bf16.mxu0 (!%p195_p10), %v1409_v1  ;;  %1193 = vmatprep.subr.bf16.mxu1 (!%p195_p10), %v1409_v1  ;;  %p236_p11 = scmp.lt.s32.totalorder (!%p195_p10), %s1060_s30, 255  ;;  %v1274_v4 = vld [vmem:[%s1736_s1 + $0x18] sm:$0xff] (!%p195_p10)   ;;  %v1275_v7 = vld [vmem:[%s1736_s1 + $0x20] sm:$0xff] (!%p195_p10)   ;;  %v1276_v8 = vld [vmem:[%s1736_s1 + $0x28] sm:$0xff] (!%p195_p10)   ;;  %vm568_vm1 = vcmask (!%p195_p10), 1043456  }
  0x10   : > { %573 = vmatpush1.bf16.msra.mxu0 (!%p195_p10), %v1271_v0  ;;  %1203 = vmatpush1.bf16.msra.mxu1 (!%p195_p10), %v1271_v0  ;;  %v1277_v9 = vld [vmem:[%s1736_s1 + $0x30] sm:$0xff] (!%p195_p10)   ;;  %v1278_v10 = vld [vmem:[%s1736_s1 + $0x38] sm:$0xff] (!%p195_p10)   ;;  %v1279_v11 = vld [vmem:[%s1736_s1 + $0x40] sm:$0xff] (!%p195_p10)   ;;  %s231_s7 = sand.u32 (!%p195_p10), 1, %s1391_s13   ;;  %vm893_vm2 = vcmask (!%p195_p10), 519168   ;;  %s1192_s18 = sshll.u32 (!%p195_p10), %s1399_s15, 11 }
  0x11   : > { %574 = vmatprep.subr.bf16.mxu0 (!%p195_p10), %v1409_v1  ;;  %1194 = vmatprep.subr.bf16.mxu1 (!%p195_p10), %v1409_v1  ;;  %v1280_v12 = vld [vmem:[%s1736_s1 + $0x48] ss:$0 sps:$4 sm:$0xff] (!%p195_p10)   ;;  %v1576_v44 = vld [vmem:[%s1737_s2] ss:$0 sm:$0xff] (!%p195_p10)  ;;  %s1059_s11 = sshll.u32 (!%p195_p10), %s231_s7, 7  ;;  %s1675_s26 = scalar_lea.hbm (!%p195_p10), %s1738_s3, %s1192_s18 }
  0x12   : > { %v570_v13 = vsel (!%p195_p10), %vm568_vm1, %v1280_v12, 0  ;;  %s1689_s15 = scalar_lea.sflag (!%p195_p10), [#allocation3], %s231_s7  ;;  %s1410_s28 = smov (!%p195_p10), [#allocation2]  }
  0x13   : > { %s1333_s29 = sshll.u32 (!%p195_p10), %s1410_s28, 4  ;;  %s1334_s29 = int_to_ptr.vmem [resolvable:$false] %s1333_s29 }
  0x14   : > { %575 = vmatpush1.bf16.msra.mxu0 (!%p195_p10), %v1272_v2  ;;  %1204 = vmatpush1.bf16.msra.mxu1 (!%p195_p10), %v1272_v2 }
  0x15   : > { %576 = vmatprep.subr.bf16.mxu0 (!%p195_p10), %v1409_v1  ;;  %1195 = vmatprep.subr.bf16.mxu1 (!%p195_p10), %v1409_v1 }
  0x16   : > { %s1749_s30 = smov (!%p236_p11, %s1060_s30), 255 }
  0x17   : > { %s1159_s6 = sshll.u32 %s1749_s30, 3  ;;  %s1335_s30 = scalar_lea.vmem %s1334_s29, 4096 }
  0x18   : > { %s1501_s9 = scalar_lea.vmem %s1735_s0, %s1159_s6  ;;  %577 = vmatpush1.bf16.msra.mxu0 %v1273_v3  ;;  %1205 = vmatpush1.bf16.msra.mxu1 %v1273_v3 }
  0x19   : > { %v1283_v5 = vld [vmem:[%s1501_s9 + $0x4] ss:$8 sps:$4 sm:$0xff]   ;;  %578 = vmatprep.subr.bf16.mxu0 %v1409_v1  ;;  %1196 = vmatprep.subr.bf16.mxu1 %v1409_v1  ;;  %v1281_v14 = vld [vmem:[%s1501_s9] ss:$8 sps:$4 sm:$0xff]   ;;  %v1287_v16 = vld [vmem:[%s1501_s9 + $0x14] ss:$8 sps:$4 sm:$0xff]  }
  0x1a   : > { %1106 = vmatprep.mubr.msk.bf16.mxu0 %vm519_vm0, %v1283_v5  ;;  %v1286_v6 = vld [vmem:[%s1501_s9 + $0x84] ss:$8 sps:$4 sm:$0xff]   ;;  %v1284_v15 = vld [vmem:[%s1501_s9 + $0x80] ss:$8 sps:$4 sm:$0xff]   ;;  %v1289_v17 = vld [vmem:[%s1501_s9 + $0x94] ss:$8 sps:$4 sm:$0xff]  }
  0x1b   : > { %1114 = vmatprep.mubr.msk.bf16.mxu1 %vm519_vm0, %v1286_v6  ;;  %v1291_v18 = vld [vmem:[%s1501_s9 + $0x10] ss:$8 sps:$4 sm:$0xff]   ;;  %v1293_v20 = vld [vmem:[%s1501_s9 + $0x24] ss:$8 sps:$4 sm:$0xff]   ;;  %v1297_v22 = vld [vmem:[%s1501_s9 + $0x20] ss:$8 sps:$4 sm:$0xff]  }
  0x1c   : > { %579 = vmatpush1.bf16.msra.mxu0 %v1274_v4  ;;  %1206 = vmatpush1.bf16.msra.mxu1 %v1274_v4  ;;  %v1292_v19 = vld [vmem:[%s1501_s9 + $0x90] ss:$8 sps:$4 sm:$0xff]   ;;  %v1295_v21 = vld [vmem:[%s1501_s9 + $0xa4] ss:$8 sps:$4 sm:$0xff]   ;;  %v1298_v23 = vld [vmem:[%s1501_s9 + $0xa0] ss:$8 sps:$4 sm:$0xff]  }
  0x1d   : > { %580 = vmatprep.subr.bf16.mxu0 %v1409_v1  ;;  %1197 = vmatprep.subr.bf16.mxu1 %v1409_v1  ;;  %v1299_v24 = vld [vmem:[%s1501_s9 + $0x34] ss:$8 sps:$4 sm:$0xff]   ;;  %v1303_v26 = vld [vmem:[%s1501_s9 + $0x30] ss:$8 sps:$4 sm:$0xff]   ;;  %v1305_v28 = vld [vmem:[%s1501_s9 + $0x44] ss:$8 sps:$4 sm:$0xff]  }
  0x1e   : > { %v1301_v25 = vld [vmem:[%s1501_s9 + $0xb4] ss:$8 sps:$4 sm:$0xff]   ;;  %v1304_v27 = vld [vmem:[%s1501_s9 + $0xb0] ss:$8 sps:$4 sm:$0xff]   ;;  %v1307_v29 = vld [vmem:[%s1501_s9 + $0xc4] ss:$8 sps:$4 sm:$0xff]  }
  0x1f   : > { %v1309_v30 = vld [vmem:[%s1501_s9 + $0x40] ss:$8 sps:$4 sm:$0xff]   ;;  %v1311_v32 = vld [vmem:[%s1501_s9 + $0x54] ss:$8 sps:$4 sm:$0xff]   ;;  %v1315_v34 = vld [vmem:[%s1501_s9 + $0x50] ss:$8 sps:$4 sm:$0xff]  }
  0x20   : > { %581 = vmatpush1.bf16.msra.mxu0 %v1275_v7  ;;  %1207 = vmatpush1.bf16.msra.mxu1 %v1275_v7  ;;  %v1310_v31 = vld [vmem:[%s1501_s9 + $0xc0] ss:$8 sps:$4 sm:$0xff]   ;;  %v1313_v33 = vld [vmem:[%s1501_s9 + $0xd4] ss:$8 sps:$4 sm:$0xff]   ;;  %v1316_v35 = vld [vmem:[%s1501_s9 + $0xd0] ss:$8 sps:$4 sm:$0xff]  }
  0x21   : > { %582 = vmatprep.subr.bf16.mxu0 %v1409_v1  ;;  %1198 = vmatprep.subr.bf16.mxu1 %v1409_v1  ;;  %v1317_v36 = vld [vmem:[%s1501_s9 + $0x64] ss:$8 sps:$4 sm:$0xff]   ;;  %v1321_v38 = vld [vmem:[%s1501_s9 + $0x60] ss:$8 sps:$4 sm:$0xff]   ;;  %v1323_v40 = vld [vmem:[%s1501_s9 + $0x74] ss:$8 sps:$4 sm:$0xff]  }
  0x22   : > { %v1319_v37 = vld [vmem:[%s1501_s9 + $0xe4] ss:$8 sps:$4 sm:$0xff]   ;;  %v1322_v39 = vld [vmem:[%s1501_s9 + $0xe0] ss:$8 sps:$4 sm:$0xff]   ;;  %v1325_v41 = vld [vmem:[%s1501_s9 + $0xf4] ss:$8 sps:$4 sm:$0xff]  }
  0x23   : > { %v1327_v42 = vld [vmem:[%s1501_s9 + $0x70] ss:$8 sps:$4 sm:$0xff]  }
  0x24   : > { %583 = vmatpush1.bf16.msra.mxu0 %v1276_v8  ;;  %1208 = vmatpush1.bf16.msra.mxu1 %v1276_v8  ;;  %v1328_v43 = vld [vmem:[%s1501_s9 + $0xf0] ss:$8 sps:$4 sm:$0xff]   ;;  %s1584_s9 = scalar_lea.vmem [#allocation2], %s1059_s11 }
  0x25   : > { %584 = vmatprep.subr.bf16.mxu0 %v1409_v1  ;;  %1199 = vmatprep.subr.bf16.mxu1 %v1409_v1  ;;  %s941_s19 = sshll.u32 %s1584_s9, 4  ;;  %s1677_s19 = int_to_ptr.vmem [resolvable:$true] %s941_s19 }
  0x26   : > { %s1329_s27 = scalar_lea.vmem %s1677_s19, 2048  ;;  %p1336_p1 = scmp.lt.s32.totalorder %s1677_s19, %s1334_s29 }
  0x27   : > { %p1330_p12 = scmp.ne.s32.totalorder %s1677_s19, %s1329_s27  ;;  %p1337_p2 = scmp.lt.s32.totalorder %s1335_s30, %s1329_s27 }
  0x28   : > { %585 = vmatpush1.bf16.msra.mxu0 %v1277_v9  ;;  %1209 = vmatpush1.bf16.msra.mxu1 %v1277_v9 }
  0x29   : > { %586 = vmatprep.subr.bf16.mxu0 %v1409_v1  ;;  %1200 = vmatprep.subr.bf16.mxu1 %v1409_v1  ;;  %p1331_p13 = pnand %p1330_p12, %p1473_p4  ;;  %p1338_p3 = por %p1337_p2, %p1336_p1 }
  0x2b   : > { %p1332_p0 = pneg %p1331_p13 }
  0x2c   : > { %587 = vmatpush1.bf16.msra.mxu0 %v1278_v10  ;;  %1210 = vmatpush1.bf16.msra.mxu1 %v1278_v10 }
  0x2d   : > { %588 = vmatprep.subr.bf16.mxu0 %v1409_v1  ;;  %1201 = vmatprep.subr.bf16.mxu1 %v1409_v1  ;;  %p1339_p5 = pnand %p1338_p3, %p1332_p0 }
  0x30   : > { %589 = vmatpush1.bf16.msra.mxu0 %v1279_v11  ;;  %1211 = vmatpush1.bf16.msra.mxu1 %v1279_v11 }
  0x31   : > { %590 = vmatprep.subr.bf16.mxu0 %v1409_v1  ;;  %1202 = vmatprep.subr.bf16.mxu1 %v1409_v1 }
  0x34   : > { %591 = vmatpush1.bf16.msra.mxu0 %v570_v13  ;;  %1212 = vmatpush1.bf16.msra.mxu1 %v570_v13 }
  0x37   : > { %605 = vmatmul.mubr.bf16.vlgmr.msra.gmra.mrb[0].mxu0 %v1281_v14  ;;  %669 = vmatmul.mubr.bf16.vlgmr.msra.gmra.mrb[0].mxu1 %v1284_v15 }
  0x38   : > { %1107 = vmatprep.mubr.msk.bf16.mxu0 %vm519_vm0, %v1287_v16  ;;  %1115 = vmatprep.mubr.msk.bf16.mxu1 %vm519_vm0, %v1289_v17 }
  0x3f   : > { %613 = vmatmul.mubr.bf16.gmra.mrb[4].mxu0 %v1291_v18  ;;  %677 = vmatmul.mubr.bf16.gmra.mrb[4].mxu1 %v1292_v19 }
  0x40   : > { %1108 = vmatprep.mubr.msk.bf16.mxu0 %vm519_vm0, %v1293_v20  ;;  %1116 = vmatprep.mubr.msk.bf16.mxu1 %vm519_vm0, %v1295_v21 }
  0x47   : > { %621 = vmatmul.mubr.bf16.gmra.mrb[8].mxu0 %v1297_v22  ;;  %685 = vmatmul.mubr.bf16.gmra.mrb[8].mxu1 %v1298_v23 }
  0x48   : > { %1109 = vmatprep.mubr.msk.bf16.mxu0 %vm519_vm0, %v1299_v24  ;;  %1117 = vmatprep.mubr.msk.bf16.mxu1 %vm519_vm0, %v1301_v25 }
  0x4f   : > { %629 = vmatmul.mubr.bf16.gmra.mrb[12].mxu0 %v1303_v26  ;;  %693 = vmatmul.mubr.bf16.gmra.mrb[12].mxu1 %v1304_v27 }
  0x50   : > { %1110 = vmatprep.mubr.msk.bf16.mxu0 %vm519_vm0, %v1305_v28  ;;  %1118 = vmatprep.mubr.msk.bf16.mxu1 %vm519_vm0, %v1307_v29 }
  0x57   : > { %637 = vmatmul.mubr.bf16.gmra.mrb[16].mxu0 %v1309_v30  ;;  %701 = vmatmul.mubr.bf16.gmra.mrb[16].mxu1 %v1310_v31 }
  0x58   : > { %1111 = vmatprep.mubr.msk.bf16.mxu0 %vm519_vm0, %v1311_v32  ;;  %1119 = vmatprep.mubr.msk.bf16.mxu1 %vm519_vm0, %v1313_v33 }
  0x5f   : > { %645 = vmatmul.mubr.bf16.gmra.mrb[20].mxu0 %v1315_v34  ;;  %709 = vmatmul.mubr.bf16.gmra.mrb[20].mxu1 %v1316_v35 }
  0x60   : > { %1112 = vmatprep.mubr.msk.bf16.mxu0 %vm519_vm0, %v1317_v36  ;;  %1120 = vmatprep.mubr.msk.bf16.mxu1 %vm519_vm0, %v1319_v37 }
  0x67   : > { %653 = vmatmul.mubr.bf16.gmra.mrb[24].mxu0 %v1321_v38  ;;  %717 = vmatmul.mubr.bf16.gmra.mrb[24].mxu1 %v1322_v39 }
  0x68   : > { %1113 = vmatprep.mubr.msk.bf16.mxu0 %vm519_vm0, %v1323_v40  ;;  %1121 = vmatprep.mubr.msk.bf16.mxu1 %vm519_vm0, %v1325_v41 }
  0x6f   : > { %661 = vmatmul.mubr.bf16.gmra.mrb[28].mxu0 %v1327_v42  ;;  %725 = vmatmul.mubr.bf16.gmra.mrb[28].mxu1 %v1328_v43 }
 0x10a   : > { %v606_v45 = vpop.f32.mrb[0].mxu0  ;;  %v670_v46 = vpop.f32.mrb[0].mxu1 }
 0x10b   : > { %v607_v47 = vadd.f32 %v1576_v44, %v606_v45  ;;  %v671_v48 = vadd.f32 %v1576_v44, %v670_v46  ;;  %v608_v49 = vpop.f32.mrb[1].mxu0  ;;  %v672_v50 = vpop.f32.mrb[1].mxu1 }
 0x10c   : > { %v609_v51 = vpop.f32.mrb[2].mxu0  ;;  %v673_v52 = vpop.f32.mrb[2].mxu1 }
 0x10d   : > { %v733_v53 = vmax.f32 %v607_v47, 0.0  ;;  %v749_v54 = vmax.f32 %v671_v48, 0.0  ;;  %v610_v55 = vadd.f32 %v1576_v44, %v609_v51  ;;  %v674_v56 = vadd.f32 %v1576_v44, %v673_v52  ;;  %v611_v57 = vpop.f32.mrb[3].mxu0  ;;  %v675_v58 = vpop.f32.mrb[3].mxu1 }
 0x10f   : > { %v1160_v59 = vpack.c.bf16 %v733_v53, %v733_v53  ;;  %v1176_v60 = vpack.c.bf16 %v749_v54, %v749_v54  ;;  %v734_v61 = vmax.f32 %v610_v55, 0.0  ;;  %v750_v62 = vmax.f32 %v674_v56, 0.0 }
 0x111   : > { %894 = vst.msk [vmem:[%s1584_s9] sm:$0xf] %vm893_vm2, %v1160_v59  ;;  %910 = vst.msk [vmem:[%s1584_s9 + $0x40] sm:$0xf] %vm893_vm2, %v1176_v60  ;;  %v1161_v63 = vpack.c.bf16 %v734_v61, %v734_v61  ;;  %v1177_v0 = vpack.c.bf16 %v750_v62, %v750_v62 }
 0x112   : > { %v614_v1 = vpop.f32.mrb[4].mxu0  ;;  %v678_v2 = vpop.f32.mrb[4].mxu1 }
 0x113   : > { %895 = vst.msk [vmem:[%s1584_s9 + $0x4] sm:$0xf] %vm893_vm2, %v1161_v63  ;;  %911 = vst.msk [vmem:[%s1584_s9 + $0x44] sm:$0xf] %vm893_vm2, %v1177_v0  ;;  %v615_v3 = vadd.f32 %v1576_v44, %v614_v1  ;;  %v679_v4 = vadd.f32 %v1576_v44, %v678_v2  ;;  %v616_v5 = vpop.f32.mrb[5].mxu0  ;;  %v680_v6 = vpop.f32.mrb[5].mxu1 }
 0x114   : > { %v617_v7 = vpop.f32.mrb[6].mxu0  ;;  %v681_v8 = vpop.f32.mrb[6].mxu1 }
 0x115   : > { %v735_v9 = vmax.f32 %v615_v3, 0.0  ;;  %v751_v10 = vmax.f32 %v679_v4, 0.0  ;;  %v618_v11 = vadd.f32 %v1576_v44, %v617_v7  ;;  %v682_v12 = vadd.f32 %v1576_v44, %v681_v8  ;;  %v619_v13 = vpop.f32.mrb[7].mxu0  ;;  %v683_v14 = vpop.f32.mrb[7].mxu1 }
 0x117   : > { %v1162_v15 = vpack.c.bf16 %v735_v9, %v735_v9  ;;  %v1178_v16 = vpack.c.bf16 %v751_v10, %v751_v10  ;;  %v736_v17 = vmax.f32 %v618_v11, 0.0  ;;  %v752_v18 = vmax.f32 %v682_v12, 0.0 }
 0x119   : > { %896 = vst.msk [vmem:[%s1584_s9 + $0x8] sm:$0xf] %vm893_vm2, %v1162_v15  ;;  %912 = vst.msk [vmem:[%s1584_s9 + $0x48] sm:$0xf] %vm893_vm2, %v1178_v16  ;;  %v1163_v19 = vpack.c.bf16 %v736_v17, %v736_v17  ;;  %v1179_v20 = vpack.c.bf16 %v752_v18, %v752_v18 }
 0x11a   : > { %v622_v21 = vpop.f32.mrb[8].mxu0  ;;  %v686_v22 = vpop.f32.mrb[8].mxu1 }
 0x11b   : > { %897 = vst.msk [vmem:[%s1584_s9 + $0xc] sm:$0xf] %vm893_vm2, %v1163_v19  ;;  %913 = vst.msk [vmem:[%s1584_s9 + $0x4c] sm:$0xf] %vm893_vm2, %v1179_v20  ;;  %v623_v23 = vadd.f32 %v1576_v44, %v622_v21  ;;  %v687_v24 = vadd.f32 %v1576_v44, %v686_v22  ;;  %v624_v25 = vpop.f32.mrb[9].mxu0  ;;  %v688_v26 = vpop.f32.mrb[9].mxu1 }
 0x11c   : > { %v625_v27 = vpop.f32.mrb[10].mxu0  ;;  %v689_v28 = vpop.f32.mrb[10].mxu1 }
 0x11d   : > { %v737_v29 = vmax.f32 %v623_v23, 0.0  ;;  %v753_v30 = vmax.f32 %v687_v24, 0.0  ;;  %v626_v31 = vadd.f32 %v1576_v44, %v625_v27  ;;  %v690_v32 = vadd.f32 %v1576_v44, %v689_v28  ;;  %v627_v33 = vpop.f32.mrb[11].mxu0  ;;  %v691_v34 = vpop.f32.mrb[11].mxu1 }
 0x11f   : > { %v1164_v35 = vpack.c.bf16 %v737_v29, %v737_v29  ;;  %v1180_v36 = vpack.c.bf16 %v753_v30, %v753_v30  ;;  %v738_v37 = vmax.f32 %v626_v31, 0.0  ;;  %v754_v38 = vmax.f32 %v690_v32, 0.0 }
 0x121   : > { %898 = vst.msk [vmem:[%s1584_s9 + $0x10] sm:$0xf] %vm893_vm2, %v1164_v35  ;;  %914 = vst.msk [vmem:[%s1584_s9 + $0x50] sm:$0xf] %vm893_vm2, %v1180_v36  ;;  %v1165_v39 = vpack.c.bf16 %v738_v37, %v738_v37  ;;  %v1181_v40 = vpack.c.bf16 %v754_v38, %v754_v38 }
 0x122   : > { %v630_v41 = vpop.f32.mrb[12].mxu0  ;;  %v694_v42 = vpop.f32.mrb[12].mxu1 }
 0x123   : > { %899 = vst.msk [vmem:[%s1584_s9 + $0x14] sm:$0xf] %vm893_vm2, %v1165_v39  ;;  %915 = vst.msk [vmem:[%s1584_s9 + $0x54] sm:$0xf] %vm893_vm2, %v1181_v40  ;;  %v631_v43 = vadd.f32 %v1576_v44, %v630_v41  ;;  %v695_v45 = vadd.f32 %v1576_v44, %v694_v42  ;;  %v632_v46 = vpop.f32.mrb[13].mxu0  ;;  %v696_v47 = vpop.f32.mrb[13].mxu1 }
 0x124   : > { %v633_v48 = vpop.f32.mrb[14].mxu0  ;;  %v697_v49 = vpop.f32.mrb[14].mxu1 }
 0x125   : > { %v739_v50 = vmax.f32 %v631_v43, 0.0  ;;  %v755_v51 = vmax.f32 %v695_v45, 0.0  ;;  %v634_v52 = vadd.f32 %v1576_v44, %v633_v48  ;;  %v698_v53 = vadd.f32 %v1576_v44, %v697_v49  ;;  %v635_v54 = vpop.f32.mrb[15].mxu0  ;;  %v699_v55 = vpop.f32.mrb[15].mxu1 }
 0x127   : > { %v1166_v56 = vpack.c.bf16 %v739_v50, %v739_v50  ;;  %v1182_v57 = vpack.c.bf16 %v755_v51, %v755_v51  ;;  %v740_v58 = vmax.f32 %v634_v52, 0.0  ;;  %v756_v59 = vmax.f32 %v698_v53, 0.0 }
 0x129   : > { %900 = vst.msk [vmem:[%s1584_s9 + $0x18] sm:$0xf] %vm893_vm2, %v1166_v56  ;;  %916 = vst.msk [vmem:[%s1584_s9 + $0x58] sm:$0xf] %vm893_vm2, %v1182_v57  ;;  %v1167_v60 = vpack.c.bf16 %v740_v58, %v740_v58  ;;  %v1183_v61 = vpack.c.bf16 %v756_v59, %v756_v59 }
 0x12a   : > { %v638_v62 = vpop.f32.mrb[16].mxu0  ;;  %v702_v63 = vpop.f32.mrb[16].mxu1 }
 0x12b   : > { %901 = vst.msk [vmem:[%s1584_s9 + $0x1c] sm:$0xf] %vm893_vm2, %v1167_v60  ;;  %917 = vst.msk [vmem:[%s1584_s9 + $0x5c] sm:$0xf] %vm893_vm2, %v1183_v61  ;;  %v639_v0 = vadd.f32 %v1576_v44, %v638_v62  ;;  %v703_v1 = vadd.f32 %v1576_v44, %v702_v63  ;;  %v640_v2 = vpop.f32.mrb[17].mxu0  ;;  %v704_v3 = vpop.f32.mrb[17].mxu1 }
 0x12c   : > { %v641_v4 = vpop.f32.mrb[18].mxu0  ;;  %v705_v5 = vpop.f32.mrb[18].mxu1 }
 0x12d   : > { %v741_v6 = vmax.f32 %v639_v0, 0.0  ;;  %v757_v7 = vmax.f32 %v703_v1, 0.0  ;;  %v642_v8 = vadd.f32 %v1576_v44, %v641_v4  ;;  %v706_v9 = vadd.f32 %v1576_v44, %v705_v5  ;;  %v643_v10 = vpop.f32.mrb[19].mxu0  ;;  %v707_v11 = vpop.f32.mrb[19].mxu1 }
 0x12f   : > { %v1168_v12 = vpack.c.bf16 %v741_v6, %v741_v6  ;;  %v1184_v13 = vpack.c.bf16 %v757_v7, %v757_v7  ;;  %v742_v14 = vmax.f32 %v642_v8, 0.0  ;;  %v758_v15 = vmax.f32 %v706_v9, 0.0 }
 0x131   : > { %902 = vst.msk [vmem:[%s1584_s9 + $0x20] sm:$0xf] %vm893_vm2, %v1168_v12  ;;  %918 = vst.msk [vmem:[%s1584_s9 + $0x60] sm:$0xf] %vm893_vm2, %v1184_v13  ;;  %v1169_v16 = vpack.c.bf16 %v742_v14, %v742_v14  ;;  %v1185_v17 = vpack.c.bf16 %v758_v15, %v758_v15 }
 0x132   : > { %v646_v18 = vpop.f32.mrb[20].mxu0  ;;  %v710_v19 = vpop.f32.mrb[20].mxu1 }
 0x133   : > { %903 = vst.msk [vmem:[%s1584_s9 + $0x24] sm:$0xf] %vm893_vm2, %v1169_v16  ;;  %919 = vst.msk [vmem:[%s1584_s9 + $0x64] sm:$0xf] %vm893_vm2, %v1185_v17  ;;  %v647_v20 = vadd.f32 %v1576_v44, %v646_v18  ;;  %v711_v21 = vadd.f32 %v1576_v44, %v710_v19  ;;  %v648_v22 = vpop.f32.mrb[21].mxu0  ;;  %v712_v23 = vpop.f32.mrb[21].mxu1 }
 0x134   : > { %v649_v24 = vpop.f32.mrb[22].mxu0  ;;  %v713_v25 = vpop.f32.mrb[22].mxu1 }
 0x135   : > { %v743_v26 = vmax.f32 %v647_v20, 0.0  ;;  %v759_v27 = vmax.f32 %v711_v21, 0.0  ;;  %v650_v28 = vadd.f32 %v1576_v44, %v649_v24  ;;  %v714_v29 = vadd.f32 %v1576_v44, %v713_v25  ;;  %v651_v30 = vpop.f32.mrb[23].mxu0  ;;  %v715_v31 = vpop.f32.mrb[23].mxu1 }
 0x137   : > { %v1170_v32 = vpack.c.bf16 %v743_v26, %v743_v26  ;;  %v1186_v33 = vpack.c.bf16 %v759_v27, %v759_v27  ;;  %v744_v34 = vmax.f32 %v650_v28, 0.0  ;;  %v760_v35 = vmax.f32 %v714_v29, 0.0 }
 0x139   : > { %904 = vst.msk [vmem:[%s1584_s9 + $0x28] sm:$0xf] %vm893_vm2, %v1170_v32  ;;  %920 = vst.msk [vmem:[%s1584_s9 + $0x68] sm:$0xf] %vm893_vm2, %v1186_v33  ;;  %v1171_v36 = vpack.c.bf16 %v744_v34, %v744_v34  ;;  %v1187_v37 = vpack.c.bf16 %v760_v35, %v760_v35 }
 0x13a   : > { %v654_v38 = vpop.f32.mrb[24].mxu0  ;;  %v718_v39 = vpop.f32.mrb[24].mxu1 }
 0x13b   : > { %905 = vst.msk [vmem:[%s1584_s9 + $0x2c] sm:$0xf] %vm893_vm2, %v1171_v36  ;;  %921 = vst.msk [vmem:[%s1584_s9 + $0x6c] sm:$0xf] %vm893_vm2, %v1187_v37  ;;  %v655_v40 = vadd.f32 %v1576_v44, %v654_v38  ;;  %v719_v41 = vadd.f32 %v1576_v44, %v718_v39  ;;  %v656_v42 = vpop.f32.mrb[25].mxu0  ;;  %v720_v43 = vpop.f32.mrb[25].mxu1 }
 0x13c   : > { %v657_v45 = vpop.f32.mrb[26].mxu0  ;;  %v721_v46 = vpop.f32.mrb[26].mxu1 }
 0x13d   : > { %v745_v47 = vmax.f32 %v655_v40, 0.0  ;;  %v761_v48 = vmax.f32 %v719_v41, 0.0  ;;  %v658_v49 = vadd.f32 %v1576_v44, %v657_v45  ;;  %v722_v50 = vadd.f32 %v1576_v44, %v721_v46  ;;  %v659_v51 = vpop.f32.mrb[27].mxu0  ;;  %v723_v52 = vpop.f32.mrb[27].mxu1 }
 0x13f   : > { %v1172_v53 = vpack.c.bf16 %v745_v47, %v745_v47  ;;  %v1188_v54 = vpack.c.bf16 %v761_v48, %v761_v48  ;;  %v746_v55 = vmax.f32 %v658_v49, 0.0  ;;  %v762_v56 = vmax.f32 %v722_v50, 0.0 }
 0x141   : > { %906 = vst.msk [vmem:[%s1584_s9 + $0x30] sm:$0xf] %vm893_vm2, %v1172_v53  ;;  %922 = vst.msk [vmem:[%s1584_s9 + $0x70] sm:$0xf] %vm893_vm2, %v1188_v54  ;;  %v1173_v57 = vpack.c.bf16 %v746_v55, %v746_v55  ;;  %v1189_v58 = vpack.c.bf16 %v762_v56, %v762_v56 }
 0x142   : > { %v662_v59 = vpop.f32.mrb[28].mxu0  ;;  %v726_v60 = vpop.f32.mrb[28].mxu1 }
 0x143   : > { %907 = vst.msk [vmem:[%s1584_s9 + $0x34] sm:$0xf] %vm893_vm2, %v1173_v57  ;;  %923 = vst.msk [vmem:[%s1584_s9 + $0x74] sm:$0xf] %vm893_vm2, %v1189_v58  ;;  %v663_v61 = vadd.f32 %v1576_v44, %v662_v59  ;;  %v727_v62 = vadd.f32 %v1576_v44, %v726_v60  ;;  %v664_v63 = vpop.f32.mrb[29].mxu0  ;;  %v728_v0 = vpop.f32.mrb[29].mxu1 }
 0x144   : > { %v665_v1 = vpop.f32.mrb[30].mxu0  ;;  %v729_v2 = vpop.f32.mrb[30].mxu1 }
 0x145   : > { %v747_v3 = vmax.f32 %v663_v61, 0.0  ;;  %v763_v4 = vmax.f32 %v727_v62, 0.0  ;;  %v666_v5 = vadd.f32 %v1576_v44, %v665_v1  ;;  %v730_v6 = vadd.f32 %v1576_v44, %v729_v2  ;;  %v667_v7 = vpop.f32.mrb[31].mxu0  ;;  %v731_v8 = vpop.f32.mrb[31].mxu1 }
 0x147   : > { %v1174_v9 = vpack.c.bf16 %v747_v3, %v747_v3  ;;  %v1190_v10 = vpack.c.bf16 %v763_v4, %v763_v4  ;;  %v748_v11 = vmax.f32 %v666_v5, 0.0  ;;  %v764_v12 = vmax.f32 %v730_v6, 0.0 }
 0x149   : > { %908 = vst.msk [vmem:[%s1584_s9 + $0x38] sm:$0xf] %vm893_vm2, %v1174_v9  ;;  %924 = vst.msk [vmem:[%s1584_s9 + $0x78] sm:$0xf] %vm893_vm2, %v1190_v10  ;;  %v1175_v44 = vpack.c.bf16 %v748_v11, %v748_v11  ;;  %v1191_v13 = vpack.c.bf16 %v764_v12, %v764_v12 }
 0x14b   : > { %909 = vst.msk [vmem:[%s1584_s9 + $0x3c] sm:$0xf] %vm893_vm2, %v1175_v44  ;;  %925 = vst.msk [vmem:[%s1584_s9 + $0x7c] sm:$0xf] %vm893_vm2, %v1191_v13 }
 0x14c   : > { %1342 = shalt.err (!%p1339_p5)
}
 0x14d   : > { %s1343_s4 = scalar_lea.hbm %s1675_s26, 2048  ;;  %s1347_s7 = scalar_lea.hbm %s1738_s3, 16384 }
 0x14e   : > { %p1344_p6 = scmp.ne.s32.totalorder %s1675_s26, %s1343_s4  ;;  %p1348_p10 = scmp.lt.u32.totalorder %s1675_s26, %s1738_s3 }
 0x14f   : > { %p1349_p11 = scmp.lt.u32.totalorder %s1347_s7, %s1343_s4  ;;  %p1351_p13 = scmp.lt.u32.totalorder %s1343_s4, %s1675_s26 }
 0x150   : > { %p1345_p7 = pnand %p1344_p6, %p1473_p4 }
 0x151   : > { %p1350_p12 = por %p1349_p11, %p1348_p10 }
 0x152   : > { %p1346_p9 = pneg %p1345_p7 }
 0x153   : > { %p1352_p0 = por %p1351_p13, %p1350_p12 }
 0x155   : > { %p1353_p1 = pnand %p1352_p0, %p1346_p9 }
 0x157   : > { %1356 = shalt.err (!%p1353_p1)
}
 0x158   : > { %s1411_s11 = smov 64   ;;  %s1412_s9 = smov 4  }
 0x159   : > { %1213 = dma.vmem_to_hbm [thread:$0]  (%p1473_p4), %s1677_s19, 2048, %s1675_s26, %s1689_s15, %s1411_s11, %s1411_s11, %s1412_s9  }
 0x15a PF: > { %p1219_p2 = scmp.ge.s32.totalorder %s1407_s17, 2  ;;  %s956_s18 = sand.u32 1, %s1387_s12  }
 0x15b   : > { %s957_s21 = scalar_lea.sflag [#allocation3], %s956_s18 }
 0x15c   : > { %p1216_p3 = pnand %p1219_p2, %p1480_p8 }
 0x15e   : > { %1382 = dma.done.wait (!%p1216_p3), %s957_s21, 2048  }
 0x15f   : > { %1384 = vsyncadd (!%p1216_p3), %s957_s21, 4294965248  ;;  %s16_s17 = sadd.s32 1, %s1407_s17   ;;  %s1741_s12 = smov %s1391_s13 }
 0x160   : > { %p13_p5 = scmp.ge.s32.totalorder %s16_s17, 10   ;;  %s1742_s13 = smov %s1395_s14 }
 0x161   : > { %s1743_s14 = smov %s1486_s25  ;;  %s1744_s15 = smov %s1403_s16 }
 0x162   : > { %s1745_s16 = smov %s1747_s20  ;;  %15 = sbr.rel (!%p13_p5) target bundleno = 4 (0x4), region = 73 }
 0x169   :  { %962 = vsyncpa [#allocation3], 1 }
 0x16a   :  { %964 = vsyncpa [#allocation3 + $0x1], 1 }

</bundles_post_ra>
